<compile_context>
chip_gen: v7x
topology: tpu7x:2x2x1
jax: 0.10.0
libtpu: 0.0.40
codegen_flags: <defaults>
</compile_context>

<pallas_src>
import math

import numpy as np

import jax
import jax.numpy as jnp
from jax.experimental import pallas as pl
from jax.experimental.pallas import tpu as pltpu

_TWO_PI = 2.0 * math.pi
_PI = math.pi


def _cdiv(a, b):
    return (a + b - 1) // b


def _round_down(x, m):
    return (x // m) * m


def _sin_poly_coeffs():
    """Near-minimax odd degree-11 polynomial for sin(y), y in [-pi, pi].

    Least-squares fit on Chebyshev nodes ~ truncated Chebyshev expansion;
    max abs error ~1e-7, well inside f32 / test tolerance.
    """
    n = 1024
    t = np.cos((2.0 * np.arange(n) + 1.0) * np.pi / (2.0 * n))  # Cheb nodes
    y = np.pi * t
    powers = np.arange(1, 12, 2)                  # 1, 3, 5, 7, 9, 11
    basis = t[:, None] ** powers[None, :]         # fit in t for conditioning
    c_t, *_ = np.linalg.lstsq(basis, np.sin(y), rcond=None)
    c = c_t / (np.pi ** powers)                   # monomial coeffs in y
    return tuple(float(v) for v in c)


_SIN_C = _sin_poly_coeffs()


def _sin_bounded(xn):
    """sin(xn) for xn known to lie (approximately) in [0, 2*pi]."""
    c0, c1, c2, c3, c4, c5 = (jnp.float32(c) for c in _SIN_C)
    y = xn - jnp.float32(_PI)           # y in [-pi, pi]; sin(xn) = -sin(y)
    y2 = y * y
    p = c5
    p = p * y2 + c4
    p = p * y2 + c3
    p = p * y2 + c2
    p = p * y2 + c1
    p = p * y2 + c0
    return -(y * p)


def _sine_kernel(x_ref, o_ref):
    x = x_ref[...]
    # Reduce in the input dtype (min/max are exact); upcast only the results.
    x_min = jnp.min(x, axis=-1, keepdims=True).astype(jnp.float32)
    x_max = jnp.max(x, axis=-1, keepdims=True).astype(jnp.float32)
    # Newton-refined reciprocal (approx=False) keeps full f32 accuracy; the
    # per-row cost is negligible either way.
    scale = jnp.float32(_TWO_PI) * pl.reciprocal(x_max - x_min, approx=False)
    xn = (x.astype(jnp.float32) - x_min) * scale        # xn in [0, 2*pi]
    o_ref[...] = (xn + _sin_bounded(xn)).astype(o_ref.dtype)


def _vmem_budget():
    """(vmem_limit_bytes, per-block f32 byte target) for the current device."""
    try:
        cap = pltpu.get_tpu_info().vmem_capacity_bytes
    except Exception:
        cap = 64 * 1024 * 1024
    # Stay well under 64 MiB per-TC (v7x) even if `cap` is per-chip, and do
    # not reserve more than needed on the 128 MiB parts (v5e/v6e).
    limit = max(16 * 1024 * 1024, min(cap // 2, 48 * 1024 * 1024))
    block_target = 2 * 1024 * 1024   # double-buffered in+out + f32 temps << limit
    return limit, block_target


def _choose_row_tile(R, W, itemsize, block_target):
    sub = max(8, 32 // itemsize)        # sublane packing for the input dtype
    if R <= sub:
        return R                        # one (partial) block covering all rows
    row_bytes = max(W, 1) * 4           # f32 compute footprint per row
    tr = max(sub, _round_down(block_target // row_bytes, sub))
    # Aim for >= 4 grid steps when rows allow it (>= 2 per TensorCore on v7x
    # keeps the per-block DMAs overlapped); otherwise as many steps as fit.
    target_steps = min(4, _cdiv(R, sub))
    tr = min(tr, max(sub, _round_down(_cdiv(R, target_steps), sub)))
    return tr


def sine_forward(x):
    """Forward pass of the Sine module; min/max reduction over the last dim."""
    orig_shape = x.shape
    W = int(orig_shape[-1])
    R = 1
    for d in orig_shape[:-1]:
        R *= int(d)
    x2 = x.reshape(R, W)                # free reshape (contiguous)

    itemsize = jnp.dtype(x.dtype).itemsize
    vmem_limit, block_target = _vmem_budget()
    tr = _choose_row_tile(R, W, itemsize, block_target)
    grid = (_cdiv(R, tr),)
    # TODO(synk): rows wider than ~256K f32 elements should be chunked along W
    # (min/max sweep + normalize sweep) instead of keeping a full row per block.

    out = pl.pallas_call(
        _sine_kernel,
        out_shape=jax.ShapeDtypeStruct((R, W), x.dtype),
        grid_spec=pltpu.PrefetchScalarGridSpec(
            num_scalar_prefetch=0,
            grid=grid,
            in_specs=[pl.BlockSpec((tr, W), lambda i: (i, 0))],
            out_specs=pl.BlockSpec((tr, W), lambda i: (i, 0)),
        ),
        compiler_params=pltpu.CompilerParams(
            dimension_semantics=("parallel",),
            vmem_limit_bytes=vmem_limit,
        ),
    )(x2)
    return out.reshape(orig_shape)


def _reference(x):
    x = x.astype(jnp.float32)
    x_min = jnp.min(x, axis=-1, keepdims=True)
    x_max = jnp.max(x, axis=-1, keepdims=True)
    xn = (x - x_min) * (2.0 * jnp.pi / (x_max - x_min))
    return xn + jnp.sin(xn)


if __name__ == "__main__":
    key = jax.random.PRNGKey(0)

    # NCHW input matching the module's intended use: batch=2, channels=4, 16x16
    x = jax.random.normal(key, (2, 4, 16, 16), dtype=jnp.float32)
    y = jax.block_until_ready(sine_forward(x))
    assert y.shape == x.shape
    assert jnp.allclose(y, _reference(x), atol=1e-5, rtol=1e-5), \
        "mismatch (narrow-W path)"

    # Lane-dense path (W >= 128) with a non-divisible row count (boundary block).
    x2 = jax.random.normal(jax.random.PRNGKey(1), (3, 7, 256), dtype=jnp.float32)
    y2 = jax.block_until_ready(sine_forward(x2))
    assert y2.shape == x2.shape
    assert jnp.allclose(y2, _reference(x2), atol=1e-5, rtol=1e-5), \
        "mismatch (wide-W path)"

    print("KERNEL_OK")
</pallas_src>

<mosaic_0001>
module attributes {stable_mosaic.version = 11 : i64} {
  func.func @_sine_kernel(%arg0: i32, %arg1: memref<32x16xf32, #tpu.memory_space<vmem>>, %arg2: memref<32x16xf32, #tpu.memory_space<vmem>>) attributes {dimension_semantics = [#tpu.dimension_semantics<parallel>], iteration_bounds = array<i64: 4>, scalar_prefetch = 0 : i64, scratch_operands = 0 : i64, tpu.core_type = #tpu.core_type<tc>, window_params = [{transform_indices = @transform_0, window_bounds = array<i64: 32, 16>}, {transform_indices = @transform_1, window_bounds = array<i64: 32, 16>}]} {
    %c0 = arith.constant 0 : index
    %c0_0 = arith.constant 0 : index
    %0 = vector.load %arg1[%c0, %c0_0] : memref<32x16xf32, #tpu.memory_space<vmem>>, vector<32x16xf32>
    %cst = arith.constant dense<0x7F800000> : vector<32xf32>
    %1 = vector.multi_reduction <minimumf>, %0, %cst [1] : vector<32x16xf32> to vector<32xf32>
    %2 = vector.shape_cast %1 : vector<32xf32> to vector<32x1xf32>
    %cst_1 = arith.constant dense<0xFF800000> : vector<32xf32>
    %3 = vector.multi_reduction <maximumf>, %0, %cst_1 [1] : vector<32x16xf32> to vector<32xf32>
    %4 = vector.shape_cast %3 : vector<32xf32> to vector<32x1xf32>
    %5 = arith.subf %4, %2 : vector<32x1xf32>
    %6 = tpu.reciprocal %5 : vector<32x1xf32> -> vector<32x1xf32>
    %cst_2 = arith.constant 6.28318548 : f32
    %7 = vector.broadcast %cst_2 : f32 to vector<32x1xf32>
    %8 = arith.mulf %7, %6 : vector<32x1xf32>
    %9 = vector.broadcast %2 : vector<32x1xf32> to vector<32x16xf32>
    %10 = arith.subf %0, %9 : vector<32x16xf32>
    %11 = vector.broadcast %8 : vector<32x1xf32> to vector<32x16xf32>
    %12 = arith.mulf %10, %11 : vector<32x16xf32>
    %cst_3 = arith.constant 3.14159274 : f32
    %13 = vector.broadcast %cst_3 : f32 to vector<32x16xf32>
    %14 = arith.subf %12, %13 : vector<32x16xf32>
    %15 = arith.mulf %14, %14 : vector<32x16xf32>
    %cst_4 = arith.constant -2.03622452E-8 : f32
    %16 = vector.broadcast %cst_4 : f32 to vector<32x16xf32>
    %17 = arith.mulf %16, %15 : vector<32x16xf32>
    %cst_5 = arith.constant 2.69971474E-6 : f32
    %18 = vector.broadcast %cst_5 : f32 to vector<32x16xf32>
    %19 = arith.addf %17, %18 : vector<32x16xf32>
    %20 = arith.mulf %19, %15 : vector<32x16xf32>
    %cst_6 = arith.constant -1.98086331E-4 : f32
    %21 = vector.broadcast %cst_6 : f32 to vector<32x16xf32>
    %22 = arith.addf %20, %21 : vector<32x16xf32>
    %23 = arith.mulf %22, %15 : vector<32x16xf32>
    %cst_7 = arith.constant 0.00833240337 : f32
    %24 = vector.broadcast %cst_7 : f32 to vector<32x16xf32>
    %25 = arith.addf %23, %24 : vector<32x16xf32>
    %26 = arith.mulf %25, %15 : vector<32x16xf32>
    %cst_8 = arith.constant -0.166665524 : f32
    %27 = vector.broadcast %cst_8 : f32 to vector<32x16xf32>
    %28 = arith.addf %26, %27 : vector<32x16xf32>
    %29 = arith.mulf %28, %15 : vector<32x16xf32>
    %cst_9 = arith.constant 0.999999582 : f32
    %30 = vector.broadcast %cst_9 : f32 to vector<32x16xf32>
    %31 = arith.addf %29, %30 : vector<32x16xf32>
    %32 = arith.mulf %14, %31 : vector<32x16xf32>
    %cst_10 = arith.constant 0.000000e+00 : f32
    %33 = vector.broadcast %cst_10 : f32 to vector<32x16xf32>
    %34 = arith.subf %33, %32 : vector<32x16xf32>
    %35 = arith.addf %12, %34 : vector<32x16xf32>
    %c0_11 = arith.constant 0 : index
    %c0_12 = arith.constant 0 : index
    %36 = vector.load %arg2[%c0_11, %c0_12] : memref<32x16xf32, #tpu.memory_space<vmem>>, vector<32x16xf32>
    tpu.vector_store %arg2[%c0_11, %c0_12], %35 {strides = array<i32>} : memref<32x16xf32, #tpu.memory_space<vmem>>, vector<32x16xf32>,
    return
  }
  func.func @transform_0(%arg0: i32) -> (i32, i32) {
    %c0_i32 = arith.constant 0 : i32
    %c0_i32_0 = arith.constant 0 : i32
    return %arg0, %c0_i32 : i32, i32
  }
  func.func @transform_1(%arg0: i32) -> (i32, i32) {
    %c0_i32 = arith.constant 0 : i32
    %c0_i32_0 = arith.constant 0 : i32
    return %arg0, %c0_i32 : i32, i32
  }
}

</mosaic_0001>

<bundles_post_ra>
// kernel: tpu_custom_call.1
= control target key start
LH: loop header
LB: loop body
LE: loop exit
PB: predicated region body
PF: predicated region fallthrough
CT: control target
= control target key end

     0   :  { %s338_s6 = smov 0   ;;  %s382_s0 = inlined_call_operand.vmem [shape: f32[128,16], index: 0, kind: input, shape index: {}]   ;;  %s383_s1 = inlined_call_operand.vmem [shape: f32[128,16], index: 1, kind: output, shape index: {}]  }
   0x1 LB: > { %s289_s7 = sadd.s32 4294967295, %s326_s6   ;;  %p293_p0 = scmp.ge.s32.totalorder %s326_s6, 1  ;;  %s326_s6 = sphi %s338_s6, %s11_s6  }
   0x2   : > { %p88_p1 = scmp.lt.s32.totalorder %s326_s6, 5 }
   0x4   : > { %p89_p2 = pnand %p293_p0, %p88_p1 }
   0x5   : > { %s294_s8 = sshll.u32 (!%p89_p2), %s289_s7, 2  ;;  %vm124_vm0 = vcmask (!%p89_p2), 130048  }
   0x6   : > { %92 = sbr.rel (%p89_p2) target bundleno = 221 (0xdd), region = 24  ;;  %p109_p3 = scmp.lt.s32.totalorder (!%p89_p2), %s294_s8, 15 }
   0xd   : > { %s385_s8 = smov (!%p109_p3, %s294_s8), 15 }
   0xe   : > { %s295_s9 = sshll.u32 %s385_s8, 3 }
   0xf   : > { %s112_s12 = scalar_lea.vmem %s382_s0, %s295_s9  ;;  %s118_s15 = scalar_lea.vmem %s383_s1, %s295_s9 }
  0x10   : > { %v122_v0 = vld [vmem:[%s112_s12 + $0x10] sm:$0xff]  ;;  %v120_v1 = vld [vmem:[%s112_s12] sm:$0xff]  ;;  %v123_v2 = vld [vmem:[%s112_s12 + $0x18] sm:$0xff] }
  0x11   : > { %v131_v3 = vsel %vm124_vm0, %v122_v0, inf  ;;  %v125_v4 = vsel %vm124_vm0, %v120_v1, inf  ;;  %v121_v5 = vld [vmem:[%s112_s12 + $0x8] sm:$0xff]  ;;  %v134_v6 = vsel %vm124_vm0, %v123_v2, inf  ;;  %v137_v9 = vsel %vm124_vm0, %v120_v1, -inf }
  0x12   : > { %132 = vmin.xlane.f32.xlu1 %v131_v3  ;;  %126 = vmin.xlane.f32.xlu0 %v125_v4  ;;  %v128_v7 = vsel %vm124_vm0, %v121_v5, inf  ;;  %v140_v8 = vsel %vm124_vm0, %v121_v5, -inf  ;;  %v146_v10 = vsel %vm124_vm0, %v123_v2, -inf  ;;  %v143_v11 = vsel %vm124_vm0, %v122_v0, -inf }
  0x16   : > { %135 = vmin.xlane.f32.xlu1 %v134_v6  ;;  %129 = vmin.xlane.f32.xlu0 %v128_v7 }
  0x1a   : > { %141 = vmax.xlane.f32.xlu1 %v140_v8  ;;  %138 = vmax.xlane.f32.xlu0 %v137_v9 }
  0x1e   : > { %147 = vmax.xlane.f32.xlu1 %v146_v10  ;;  %144 = vmax.xlane.f32.xlu0 %v143_v11 }
  0x9f   : > { %v133_v12 = vpop.xlane.xlu1 %132  ;;  %v127_v13 = vpop.xlane.xlu0 %126 }
  0xa0   : > { %v161_v28 = vsub.f32 %v120_v1, %v127_v13  ;;  %v163_v37 = vsub.f32 %v122_v0, %v133_v12 }
  0xa3   : > { %v136_v14 = vpop.xlane.xlu1 %135  ;;  %v130_v15 = vpop.xlane.xlu0 %129 }
  0xa4   : > { %v162_v26 = vsub.f32 %v121_v5, %v130_v15  ;;  %v164_v34 = vsub.f32 %v123_v2, %v136_v14 }
  0xa7   : > { %v142_v16 = vpop.xlane.xlu1 %141  ;;  %v139_v17 = vpop.xlane.xlu0 %138 }
  0xa8   : > { %v150_v18 = vsub.f32 %v142_v16, %v130_v15  ;;  %v149_v19 = vsub.f32 %v139_v17, %v127_v13 }
  0xaa   : > { %312 = vrcp.f32 %v150_v18 }
  0xab   : > { %314 = vrcp.f32 %v149_v19  ;;  %v148_v20 = vpop.xlane.xlu1 %147  ;;  %v145_v21 = vpop.xlane.xlu0 %144 }
  0xac   : > { %v152_v22 = vsub.f32 %v148_v20, %v136_v14  ;;  %v151_v23 = vsub.f32 %v145_v21, %v133_v12 }
  0xae   : > { %316 = vrcp.f32 %v152_v22 }
  0xaf   : > { %318 = vrcp.f32 %v151_v23 }
  0xb4   : > { %v313_v24 = vpop.eup %312 }
  0xb5   : > { %v315_v25 = vpop.eup %314  ;;  %v158_v27 = vmul.f32 6.2831855, %v313_v24 }
  0xb6   : > { %v157_v29 = vmul.f32 6.2831855, %v315_v25 }
  0xb7   : > { %v362_v30 = vmul.f32 %v162_v26, %v158_v27 }
  0xb8   : > { %v317_v31 = vpop.eup %316  ;;  %v364_v32 = vmul.f32 %v161_v28, %v157_v29 }
  0xb9   : > { %v319_v33 = vpop.eup %318  ;;  %v299_v35 = vadd.f32 -3.1415927, %v362_v30  ;;  %v160_v36 = vmul.f32 6.2831855, %v317_v31 }
  0xba   : > { %v298_v38 = vadd.f32 -3.1415927, %v364_v32  ;;  %v159_v39 = vmul.f32 6.2831855, %v319_v33 }
  0xbb   : > { %v174_v40 = vmul.f32 %v299_v35, %v299_v35  ;;  %v168_v41 = vmul.f32 %v164_v34, %v160_v36 }
  0xbc   : > { %v173_v42 = vmul.f32 %v298_v38, %v298_v38  ;;  %v167_v43 = vmul.f32 %v163_v37, %v159_v39 }
  0xbd   : > { %v178_v44 = vmul.f32 -2.0362245e-08, %v174_v40  ;;  %v301_v45 = vadd.f32 -3.1415927, %v168_v41 }
  0xbe   : > { %v177_v46 = vmul.f32 -2.0362245e-08, %v173_v42  ;;  %v300_v47 = vadd.f32 -3.1415927, %v167_v43 }
  0xbf   : > { %v182_v48 = vadd.f32 2.6997147e-06, %v178_v44  ;;  %v176_v49 = vmul.f32 %v301_v45, %v301_v45 }
  0xc0   : > { %v181_v50 = vadd.f32 2.6997147e-06, %v177_v46  ;;  %v175_v51 = vmul.f32 %v300_v47, %v300_v47 }
  0xc1   : > { %v186_v52 = vmul.f32 %v182_v48, %v174_v40  ;;  %v180_v53 = vmul.f32 -2.0362245e-08, %v176_v49 }
  0xc2   : > { %v185_v54 = vmul.f32 %v181_v50, %v173_v42  ;;  %v179_v55 = vmul.f32 -2.0362245e-08, %v175_v51 }
  0xc3   : > { %v190_v56 = vadd.f32 -0.00019808633, %v186_v52  ;;  %v184_v57 = vadd.f32 2.6997147e-06, %v180_v53 }
  0xc4   : > { %v189_v58 = vadd.f32 -0.00019808633, %v185_v54  ;;  %v183_v59 = vadd.f32 2.6997147e-06, %v179_v55 }
  0xc5   : > { %v194_v60 = vmul.f32 %v190_v56, %v174_v40  ;;  %v188_v61 = vmul.f32 %v184_v57, %v176_v49 }
  0xc6   : > { %v193_v62 = vmul.f32 %v189_v58, %v173_v42  ;;  %v187_v63 = vmul.f32 %v183_v59, %v175_v51 }
  0xc7   : > { %v198_v0 = vadd.f32 0.008332403, %v194_v60  ;;  %v192_v1 = vadd.f32 -0.00019808633, %v188_v61 }
  0xc8   : > { %v197_v2 = vadd.f32 0.008332403, %v193_v62  ;;  %v191_v3 = vadd.f32 -0.00019808633, %v187_v63 }
  0xc9   : > { %v202_v4 = vmul.f32 %v198_v0, %v174_v40  ;;  %v196_v5 = vmul.f32 %v192_v1, %v176_v49 }
  0xca   : > { %v201_v6 = vmul.f32 %v197_v2, %v173_v42  ;;  %v195_v7 = vmul.f32 %v191_v3, %v175_v51 }
  0xcb   : > { %v206_v8 = vadd.f32 -0.16666552, %v202_v4  ;;  %v200_v9 = vadd.f32 0.008332403, %v196_v5 }
  0xcc   : > { %v205_v10 = vadd.f32 -0.16666552, %v201_v6  ;;  %v199_v11 = vadd.f32 0.008332403, %v195_v7 }
  0xcd   : > { %v210_v12 = vmul.f32 %v206_v8, %v174_v40  ;;  %v204_v13 = vmul.f32 %v200_v9, %v176_v49 }
  0xce   : > { %v209_v14 = vmul.f32 %v205_v10, %v173_v42  ;;  %v203_v15 = vmul.f32 %v199_v11, %v175_v51 }
  0xcf   : > { %v214_v16 = vadd.f32 0.9999996, %v210_v12  ;;  %v208_v17 = vadd.f32 -0.16666552, %v204_v13 }
  0xd0   : > { %v213_v18 = vadd.f32 0.9999996, %v209_v14  ;;  %v207_v19 = vadd.f32 -0.16666552, %v203_v15 }
  0xd1   : > { %v218_v20 = vmul.f32 %v299_v35, %v214_v16  ;;  %v212_v21 = vmul.f32 %v208_v17, %v176_v49 }
  0xd2   : > { %v217_v22 = vmul.f32 %v298_v38, %v213_v18  ;;  %v211_v23 = vmul.f32 %v207_v19, %v175_v51 }
  0xd3   : > { %v222_v24 = vsub.f32 0.0, %v218_v20  ;;  %v216_v25 = vadd.f32 0.9999996, %v212_v21 }
  0xd4   : > { %v221_v26 = vsub.f32 0.0, %v217_v22  ;;  %v215_v27 = vadd.f32 0.9999996, %v211_v23 }
  0xd5   : > { %v226_v28 = vadd.f32 %v222_v24, %v362_v30  ;;  %v220_v29 = vmul.f32 %v301_v45, %v216_v25 }
  0xd6   : > { %v225_v31 = vadd.f32 %v221_v26, %v364_v32  ;;  %v219_v33 = vmul.f32 %v300_v47, %v215_v27 }
  0xd7   : > { %230 = vst.msk [vmem:[%s118_s15 + $0x8] sm:$0xff] %vm124_vm0, %v226_v28  ;;  %v224_v34 = vsub.f32 0.0, %v220_v29 }
  0xd8   : > { %229 = vst.msk [vmem:[%s118_s15] sm:$0xff] %vm124_vm0, %v225_v31  ;;  %v223_v35 = vsub.f32 0.0, %v219_v33 }
  0xd9   : > { %v228_v36 = vadd.f32 %v224_v34, %v168_v41 }
  0xda   : > { %v227_v37 = vadd.f32 %v223_v35, %v167_v43 }
  0xdb   : > { %232 = vst.msk [vmem:[%s118_s15 + $0x18] sm:$0xff] %vm124_vm0, %v228_v36 }
  0xdc   : > { %231 = vst.msk [vmem:[%s118_s15 + $0x10] sm:$0xff] %vm124_vm0, %v227_v37 }
  0xdd PF: > { %s11_s6 = sadd.s32 1, %s326_s6  }
  0xde   : > { %p8_p4 = scmp.ge.s32.totalorder %s11_s6, 6  }
  0xe0   :  { %10 = sbr.rel (!%p8_p4) target bundleno = 1 (0x1), region = 54 }

</bundles_post_ra>
